<compile_context>
chip_gen: v6e
topology: v6e:2x2x1
jax: 0.10.0
libtpu: 0.0.40
codegen_flags: <defaults>
</compile_context>

<pallas_src>
import functools
import math

import jax
import jax.numpy as jnp
from jax import lax
from jax.experimental import pallas as pl
from jax.experimental.pallas import tpu as pltpu

IN_FEATURES = 256
OUT_FEATURES = 4
DEFAULT_TILE_R = 512  # rows per grid step (multiple of 8)


def _fused_row_kernel(x_ref, w_ref, b_ref, o_ref, *, patches, tile_r):
    # x_ref: (TILE_R, 256)   w_ref: (256, 8)   b_ref: (1, 8)   o_ref: (TILE_R, 4)
    x = x_ref[...]
    w = w_ref[...]
    b = b_ref[...]
    y = jnp.dot(x, w, preferred_element_type=jnp.float32) + b        # (TILE_R, 8)

    # Global flattened row index r = b * P + p;  p == 0  ->  use fc columns (0:4),
    # otherwise use the shared ss_fc columns (4:8).
    row0 = pl.program_id(0) * tile_r
    rows = row0 + lax.broadcasted_iota(jnp.int32, (tile_r, OUT_FEATURES), 0)
    is_fc = (rows % patches) == 0

    out = jnp.where(is_fc, y[:, :OUT_FEATURES], y[:, OUT_FEATURES:])
    o_ref[...] = out.astype(o_ref.dtype)


def prot_classifier_forward(x, w_fc, b_fc, w_ss, b_ss, tile_r=DEFAULT_TILE_R):
    """x: [B, P, 256] with P = 1 + n_pr_patches.  Returns [B, P, 4]."""
    B, P, D = x.shape
    assert D == IN_FEATURES

    rows = B * P
    x_flat = x.reshape(rows, D)                                       # contiguous, free

    # Row tile: multiple of 8 sublanes, capped so VMEM stays small & B-independent.
    tile_r = min(tile_r, ((rows + 7) // 8) * 8)
    tile_r = max(8, tile_r)
    n_tiles = pl.cdiv(rows, tile_r)
    rows_pad = n_tiles * tile_r
    if rows_pad != rows:
        x_flat = jnp.pad(x_flat, ((0, rows_pad - rows), (0, 0)))

    # Fused weight/bias: columns 0:4 = fc, columns 4:8 = ss_fc (shared).
    w8 = jnp.concatenate([w_fc.T, w_ss.T], axis=1)                    # [256, 8]
    b8 = jnp.concatenate([b_fc, b_ss])[None, :]                       # [1, 8]

    kernel = functools.partial(_fused_row_kernel, patches=P, tile_r=tile_r)

    out_flat = pl.pallas_call(
        kernel,
        out_shape=jax.ShapeDtypeStruct((rows_pad, OUT_FEATURES), x.dtype),
        grid_spec=pltpu.PrefetchScalarGridSpec(
            num_scalar_prefetch=0,
            grid=(n_tiles,),
            in_specs=[
                pl.BlockSpec((tile_r, D), lambda r: (r, 0)),
                # Constant index_map: weight & bias resident in VMEM for the whole grid.
                pl.BlockSpec((D, 2 * OUT_FEATURES), lambda r: (0, 0)),
                pl.BlockSpec((1, 2 * OUT_FEATURES), lambda r: (0, 0)),
            ],
            out_specs=pl.BlockSpec((tile_r, OUT_FEATURES), lambda r: (r, 0)),
        ),
        compiler_params=pltpu.CompilerParams(
            dimension_semantics=("parallel",),
        ),
        cost_estimate=pl.CostEstimate(
            flops=2 * rows_pad * D * 2 * OUT_FEATURES,
            transcendentals=0,
            bytes_accessed=(rows_pad * D + rows_pad * OUT_FEATURES) * x.dtype.itemsize
            + (D * 2 * OUT_FEATURES + 2 * OUT_FEATURES) * 4,
        ),
    )(x_flat, w8, b8)

    return out_flat[:rows].reshape(B, P, OUT_FEATURES)


def _init_params(key):
    """Deterministic parameter init mirroring the module's shapes.

    kaiming_normal_ on Linear weights: std = sqrt(2 / fan_in); biases keep the
    default Linear uniform(-1/sqrt(fan_in), 1/sqrt(fan_in)) range.
    """
    k1, k2, k3, k4 = jax.random.split(key, 4)
    std = math.sqrt(2.0 / IN_FEATURES)
    bound = 1.0 / math.sqrt(IN_FEATURES)
    w_fc = std * jax.random.normal(k1, (OUT_FEATURES, IN_FEATURES), jnp.float32)
    b_fc = jax.random.uniform(k2, (OUT_FEATURES,), jnp.float32, -bound, bound)
    w_ss = std * jax.random.normal(k3, (OUT_FEATURES, IN_FEATURES), jnp.float32)
    b_ss = jax.random.uniform(k4, (OUT_FEATURES,), jnp.float32, -bound, bound)
    return w_fc, b_fc, w_ss, b_ss


if __name__ == "__main__":
    key = jax.random.PRNGKey(0)
    n_pr_patches = 3
    B = 2
    P = 1 + n_pr_patches

    k_x, k_p = jax.random.split(key)
    x = jax.random.normal(k_x, (B, P, IN_FEATURES), jnp.float32)
    w_fc, b_fc, w_ss, b_ss = _init_params(k_p)

    out = prot_classifier_forward(x, w_fc, b_fc, w_ss, b_ss)
    out = jax.block_until_ready(out)

    # Reference check against plain JAX (same math as the PyTorch module).
    ref0 = x[:, 0, :] @ w_fc.T + b_fc                                 # [B, 4]
    refs = [ref0] + [x[:, i + 1, :] @ w_ss.T + b_ss for i in range(n_pr_patches)]
    ref = jnp.stack(refs).transpose(1, 0, 2)                          # [B, P, 4]
    assert out.shape == (B, P, OUT_FEATURES)
    assert jnp.allclose(out, ref, atol=1e-4, rtol=1e-4)

    print("KERNEL_OK")
</pallas_src>

<mosaic_0001>
module attributes {stable_mosaic.version = 11 : i64} {
  func.func @_fused_row_kernel(%arg0: i32, %arg1: memref<8x256xf32, #tpu.memory_space<vmem>>, %arg2: memref<256x8xf32, #tpu.memory_space<vmem>>, %arg3: memref<1x8xf32, #tpu.memory_space<vmem>>, %arg4: memref<8x4xf32, #tpu.memory_space<vmem>>) attributes {dimension_semantics = [#tpu.dimension_semantics<parallel>], iteration_bounds = array<i64: 1>, scalar_prefetch = 0 : i64, scratch_operands = 0 : i64, tpu.core_type = #tpu.core_type<tc>, window_params = [{transform_indices = @transform_0, window_bounds = array<i64: 8, 256>}, {pipeline_mode = #tpu.pipeline_mode<synchronous>, transform_indices = @transform_1, window_bounds = array<i64: 256, 8>}, {pipeline_mode = #tpu.pipeline_mode<synchronous>, transform_indices = @transform_2, window_bounds = array<i64: 1, 8>}, {transform_indices = @transform_3, window_bounds = array<i64: 8, 4>}]} {
    %c0 = arith.constant 0 : index
    %c0_0 = arith.constant 0 : index
    %0 = vector.load %arg1[%c0, %c0_0] : memref<8x256xf32, #tpu.memory_space<vmem>>, vector<8x256xf32>
    %c0_1 = arith.constant 0 : index
    %c0_2 = arith.constant 0 : index
    %1 = vector.load %arg2[%c0_1, %c0_2] : memref<256x8xf32, #tpu.memory_space<vmem>>, vector<256x8xf32>
    %c0_3 = arith.constant 0 : index
    %c0_4 = arith.constant 0 : index
    %2 = vector.load %arg3[%c0_3, %c0_4] : memref<1x8xf32, #tpu.memory_space<vmem>>, vector<1x8xf32>
    %cst = arith.constant dense<0.000000e+00> : vector<8x8xf32>
    %3 = tpu.matmul %0, %1, %cst {dimension_numbers = #tpu.dot_dimension_numbers<[1], [0], [0], [1], [0, 0, 1, 1], [], []>} : vector<8x256xf32>, vector<256x8xf32>, vector<8x8xf32> -> vector<8x8xf32>
    %4 = vector.broadcast %2 : vector<1x8xf32> to vector<8x8xf32>
    %5 = arith.addf %3, %4 : vector<8x8xf32>
    %c8_i32 = arith.constant 8 : i32
    %6 = arith.muli %arg0, %c8_i32 : i32
    %7 = tpu.iota {dimensions = array<i32: 0>} : vector<8x4xi32>
    %8 = vector.broadcast %6 : i32 to vector<8x4xi32>
    %9 = arith.addi %8, %7 : vector<8x4xi32>
    %c4_i32 = arith.constant 4 : i32
    %c0_i32 = arith.constant 0 : i32
    %10 = arith.cmpi eq, %c4_i32, %c0_i32 : i32
    %c1_i32 = arith.constant 1 : i32
    %11 = arith.select %10, %c1_i32, %c4_i32 : i32
    %12 = vector.broadcast %11 : i32 to vector<8x4xi32>
    %13 = arith.remsi %9, %12 : vector<8x4xi32>
    %c0_i32_5 = arith.constant 0 : i32
    %14 = vector.broadcast %c0_i32_5 : i32 to vector<8x4xi32>
    %15 = arith.cmpi ne, %13, %14 : vector<8x4xi32>
    %c0_i32_6 = arith.constant 0 : i32
    %16 = vector.broadcast %c0_i32_6 : i32 to vector<8x4xi32>
    %17 = arith.cmpi slt, %13, %16 : vector<8x4xi32>
    %c0_i32_7 = arith.constant 0 : i32
    %18 = arith.cmpi slt, %11, %c0_i32_7 : i32
    %19 = vector.broadcast %18 : i1 to vector<8x4xi1>
    %20 = vector.broadcast %19 : vector<8x4xi1> to vector<8x4xi1>
    %21 = arith.xori %17, %20 : vector<8x4xi1>
    %22 = arith.andi %21, %15 : vector<8x4xi1>
    %23 = vector.broadcast %11 : i32 to vector<8x4xi32>
    %24 = arith.addi %13, %23 : vector<8x4xi32>
    %25 = arith.select %22, %24, %13 : vector<8x4xi1>, vector<8x4xi32>
    %c0_i32_8 = arith.constant 0 : i32
    %26 = vector.broadcast %c0_i32_8 : i32 to vector<8x4xi32>
    %27 = arith.cmpi eq, %25, %26 : vector<8x4xi32>
    %28 = vector.extract_strided_slice %5 {offsets = [0, 0], sizes = [8, 4], strides = [1, 1]} : vector<8x8xf32> to vector<8x4xf32>
    %29 = vector.extract_strided_slice %5 {offsets = [0, 4], sizes = [8, 4], strides = [1, 1]} : vector<8x8xf32> to vector<8x4xf32>
    %30 = arith.select %27, %28, %29 : vector<8x4xi1>, vector<8x4xf32>
    %c0_9 = arith.constant 0 : index
    %c0_10 = arith.constant 0 : index
    %31 = vector.load %arg4[%c0_9, %c0_10] : memref<8x4xf32, #tpu.memory_space<vmem>>, vector<8x4xf32>
    tpu.vector_store %arg4[%c0_9, %c0_10], %30 {strides = array<i32>} : memref<8x4xf32, #tpu.memory_space<vmem>>, vector<8x4xf32>,
    return
  }
  func.func @transform_0(%arg0: i32) -> (i32, i32) {
    %c0_i32 = arith.constant 0 : i32
    %c0_i32_0 = arith.constant 0 : i32
    return %arg0, %c0_i32 : i32, i32
  }
  func.func @transform_1(%arg0: i32) -> (i32, i32) {
    %c0_i32 = arith.constant 0 : i32
    %c0_i32_0 = arith.constant 0 : i32
    %c0_i32_1 = arith.constant 0 : i32
    return %c0_i32, %c0_i32_0 : i32, i32
  }
  func.func @transform_2(%arg0: i32) -> (i32, i32) {
    %c0_i32 = arith.constant 0 : i32
    %c0_i32_0 = arith.constant 0 : i32
    %c0_i32_1 = arith.constant 0 : i32
    return %c0_i32, %c0_i32_0 : i32, i32
  }
  func.func @transform_3(%arg0: i32) -> (i32, i32) {
    %c0_i32 = arith.constant 0 : i32
    %c0_i32_0 = arith.constant 0 : i32
    return %arg0, %c0_i32 : i32, i32
  }
}

</mosaic_0001>

<bundles_post_ra>
// kernel: tpu_custom_call.1
= control target key start
LH: loop header
LB: loop body
LE: loop exit
PB: predicated region body
PF: predicated region fallthrough
CT: control target
= control target key end

     0   :  { %s191_s28 = smov 124   ;;  %v126_v39 = vlaneseq  ;;  %vm148_vm1 = vcmask 31744   ;;  %s320_s1 = inlined_call_operand.vmem [shape: f32[256,8], index: 1, kind: input, shape index: {}]   ;;  %s321_s0 = inlined_call_operand.vmem [shape: f32[8,256], index: 0, kind: input, shape index: {}]   ;;  %s322_s2 = inlined_call_operand.vmem [shape: f32[1,8], index: 2, kind: input, shape index: {}]   ;;  %s323_s3 = inlined_call_operand.vmem [shape: f32[8,4], index: 3, kind: output, shape index: {}]  }
   0x1   :  { %v47_v0 = vld [vmem:[%s320_s1 + $0xf8] sm:$0xff]  ;;  %v46_v2 = vld [vmem:[%s320_s1 + $0xf0] sm:$0xff]  ;;  %v45_v4 = vld [vmem:[%s320_s1 + $0xe8] sm:$0xff] }
   0x2   :  { %v31_v1 = vld [vmem:[%s320_s1 + $0x78] sm:$0xff]  ;;  %155 = vmatprep.subr.mxu0 %v47_v0  ;;  %v30_v3 = vld [vmem:[%s320_s1 + $0x70] sm:$0xff]  ;;  %v29_v5 = vld [vmem:[%s320_s1 + $0x68] sm:$0xff]  ;;  %v127_v40 = vshrl.u32 %v126_v39, 7 }
   0x3   :  { %156 = vmatpush3.msra.mxu0 %v31_v1  ;;  %v44_v6 = vld [vmem:[%s320_s1 + $0xe0] sm:$0xff]  ;;  %v43_v8 = vld [vmem:[%s320_s1 + $0xd8] sm:$0xff]  ;;  %v42_v10 = vld [vmem:[%s320_s1 + $0xd0] sm:$0xff] }
   0x4   :  { %157 = vmatprep.subr.mxu0 %v46_v2  ;;  %v28_v7 = vld [vmem:[%s320_s1 + $0x60] sm:$0xff]  ;;  %v27_v9 = vld [vmem:[%s320_s1 + $0x58] sm:$0xff]  ;;  %v26_v11 = vld [vmem:[%s320_s1 + $0x50] sm:$0xff]  ;;  %v134_v41 = vand.u32 3, %v127_v40 }
   0x5   :  { %158 = vmatpush3.msra.mxu0 %v30_v3  ;;  %v41_v12 = vld [vmem:[%s320_s1 + $0xc8] sm:$0xff]  ;;  %v40_v15 = vld [vmem:[%s320_s1 + $0xc0] sm:$0xff]  ;;  %v39_v17 = vld [vmem:[%s320_s1 + $0xb8] sm:$0xff] }
   0x6   :  { %159 = vmatprep.subr.mxu0 %v45_v4  ;;  %v15_v13 = vld [vmem:[%s321_s0 + $0x8] sm:$0xff]  ;;  %v24_v16 = vld [vmem:[%s320_s1 + $0x40] sm:$0xff]  ;;  %v23_v18 = vld [vmem:[%s320_s1 + $0x38] sm:$0xff]  ;;  %vm142_vm0 = vcmp.eq.s32.totalorder %v134_v41, 0 }
   0x7   :  { %160 = vmatpush3.msra.mxu0 %v29_v5  ;;  %v25_v14 = vld [vmem:[%s320_s1 + $0x48] sm:$0xff]  ;;  %119 = vmatprep.mubr.f32.mxu0 %v15_v13  ;;  %v38_v19 = vld [vmem:[%s320_s1 + $0xb0] sm:$0xff]  ;;  %v36_v23 = vld [vmem:[%s320_s1 + $0xa0] sm:$0xff] }
   0x8   :  { %161 = vmatprep.subr.mxu0 %v44_v6  ;;  %v22_v20 = vld [vmem:[%s320_s1 + $0x30] sm:$0xff]  ;;  %v37_v21 = vld [vmem:[%s320_s1 + $0xa8] sm:$0xff]  ;;  %v20_v24 = vld [vmem:[%s320_s1 + $0x20] sm:$0xff] }
   0x9   :  { %162 = vmatpush3.msra.mxu0 %v28_v7  ;;  %v21_v22 = vld [vmem:[%s320_s1 + $0x28] sm:$0xff]  ;;  %v35_v25 = vld [vmem:[%s320_s1 + $0x98] sm:$0xff]  ;;  %v34_v27 = vld [vmem:[%s320_s1 + $0x90] sm:$0xff] }
   0xa   :  { %163 = vmatprep.subr.mxu0 %v43_v8  ;;  %v19_v26 = vld [vmem:[%s320_s1 + $0x18] sm:$0xff]  ;;  %v18_v28 = vld [vmem:[%s320_s1 + $0x10] sm:$0xff]  ;;  %v33_v29 = vld [vmem:[%s320_s1 + $0x88] sm:$0xff] }
   0xb   :  { %164 = vmatpush3.msra.mxu0 %v27_v9  ;;  %v17_v30 = vld [vmem:[%s320_s1 + $0x8] sm:$0xff]  ;;  %v32_v31 = vld [vmem:[%s320_s1 + $0x80] sm:$0xff] }
   0xc   :  { %165 = vmatprep.subr.mxu0 %v42_v10  ;;  %v16_v32 = vld [vmem:[%s320_s1] sm:$0xff] }
   0xd   :  { %166 = vmatpush3.msra.mxu0 %v26_v11  ;;  %v14_v33 = vld [vmem:[%s321_s0] sm:$0xff] }
   0xe   :  { %167 = vmatprep.subr.mxu0 %v41_v12  ;;  %v154_v36 = vld [vmem:[%s322_s2] ss:$0 sm:$0xff] }
   0xf   :  { %168 = vmatpush3.msra.mxu0 %v25_v14 }
  0x10   :  { %169 = vmatprep.subr.mxu0 %v40_v15 }
  0x11   :  { %170 = vmatpush3.msra.mxu0 %v24_v16 }
  0x12   :  { %171 = vmatprep.subr.mxu0 %v39_v17 }
  0x13   :  { %172 = vmatpush3.msra.mxu0 %v23_v18 }
  0x14   :  { %173 = vmatprep.subr.mxu0 %v38_v19 }
  0x15   :  { %174 = vmatpush3.msra.mxu0 %v22_v20 }
  0x16   :  { %175 = vmatprep.subr.mxu0 %v37_v21 }
  0x17   :  { %176 = vmatpush3.msra.mxu0 %v21_v22 }
  0x18   :  { %177 = vmatprep.subr.mxu0 %v36_v23 }
  0x19   :  { %178 = vmatpush3.msra.mxu0 %v20_v24 }
  0x1a   :  { %179 = vmatprep.subr.mxu0 %v35_v25 }
  0x1b   :  { %180 = vmatpush3.msra.mxu0 %v19_v26 }
  0x1c   :  { %181 = vmatprep.subr.mxu0 %v34_v27 }
  0x1d   :  { %182 = vmatpush3.msra.mxu0 %v18_v28 }
  0x1e   :  { %183 = vmatprep.subr.mxu0 %v33_v29 }
  0x1f   :  { %184 = vmatpush3.msra.mxu0 %v17_v30 }
  0x20   :  { %185 = vmatprep.subr.mxu0 %v32_v31 }
  0x21   :  { %186 = vmatpush3.msra.mxu0 %v16_v32 }
  0x22   :  { %120 = vmatmul.mubr.f32.vlgmr.msra.gmra.mxu0 %v14_v33 }
  0xe2   :  { %v187_v34 = vpop.f32.mrf.mxu0 }
  0xe4   :  { %v188_v35 = vpop.f32.mrf.mxu0 }
  0xe5   :  { %v189_v37 = vadd.f32 %v188_v35, %v187_v34 }
  0xe7   :  { %v122_v38 = vadd.f32 %v189_v37, %v154_v36 }
  0xe9   :  { %144 = vrot.lane.b32.xlu0 %v122_v38, %s191_s28 }
 0x15b   :  { %v145_v42 = vpop.permute.xlu0 %144 }
 0x15c   :  { %v147_v43 = vsel %vm142_vm0, %v122_v38, %v145_v42 }
 0x15d   :  { %149 = vst.msk [vmem:[%s323_s3] sm:$0xff] %vm148_vm1, %v147_v43 }

</bundles_post_ra>
